<compile_context>
chip_gen: v7x
topology: tpu7x:2x2x1
jax: 0.10.0
libtpu: 0.0.40
codegen_flags: <defaults>
</compile_context>

<pallas_src>
import math

import jax
import jax.numpy as jnp
from jax.experimental import pallas as pl
from jax.experimental.pallas import tpu as pltpu


# ----------------------------------------------------------------------------
# Exact GELU helper (erf via Abramowitz & Stegun 7.1.26, max abs err ~1.5e-7;
# the divide is routed to the EUP via pl.reciprocal(approx=True)).
# ----------------------------------------------------------------------------
_SQRT_HALF = 0.7071067811865476


def _erf(z):
    a1, a2, a3, a4, a5 = (
        0.254829592,
        -0.284496736,
        1.421413741,
        -1.453152027,
        1.061405429,
    )
    p = 0.3275911
    s = jnp.where(z >= 0.0, 1.0, -1.0)
    za = jnp.abs(z)
    # divide -> EUP reciprocal (separate bundle slot; keeps the VALU free)
    t = pl.reciprocal(1.0 + p * za, approx=True)
    poly = ((((a5 * t + a4) * t + a3) * t + a2) * t + a1) * t
    return s * (1.0 - poly * jnp.exp(-za * za))


def _gelu_exact(x):
    return 0.5 * x * (1.0 + _erf(x * _SQRT_HALF))


# ----------------------------------------------------------------------------
# Fused FFN kernel: (tm,D)x(D,H) -> +b1 -> GELU -> (tm,H)x(H,O) -> +b2 -> out
# Hidden activation never leaves VMEM/vregs.
# ----------------------------------------------------------------------------
def _ffn_kernel(x_ref, w1_ref, b1_ref, w2_ref, b2_ref, o_ref):
    # Cast the x tile to bf16 *after* it is already in VMEM (no extra HBM pass).
    x_bf = x_ref[...].astype(jnp.bfloat16)
    # fc1 (bf16 operands, f32 accumulation on the MXU) + bias
    h = (
        jnp.dot(x_bf, w1_ref[...], preferred_element_type=jnp.float32)
        + b1_ref[...]
    )
    # exact GELU in f32 (stays resident in vregs/VMEM)
    h = _gelu_exact(h)
    # fc2 (bf16 operands, f32 accumulation) + bias
    o_ref[...] = (
        jnp.dot(h.astype(jnp.bfloat16), w2_ref[...],
                preferred_element_type=jnp.float32)
        + b2_ref[...]
    ).astype(o_ref.dtype)


def _pick_tm(M, target=512):
    """Row tile: multiple of 8, <= target, and (when M allows) at least 2 grid
    steps so the 'parallel' grid axis can shard across v7x's two TensorCores."""
    if M <= 8:
        return M
    tm = min(target, (M + 1) // 2)     # >= 2 grid steps
    tm = ((tm + 7) // 8) * 8           # sublane multiple
    return max(8, min(tm, M))


def feed_forward(x, params):
    """x: [..., D]. params: dict with w1 [D,H], b1 [H], w2 [H,O], b2 [O]."""
    w1, b1, w2, b2 = params["w1"], params["b1"], params["w2"], params["b2"]
    D, H = w1.shape
    O = w2.shape[1]
    lead = x.shape[:-1]
    M = math.prod(lead)
    x2 = x.reshape(M, D)                       # no wrapper-side dtype copy of x

    # bf16 weights for the MXU (small one-time copies; pre-cast in production)
    w1b = w1.astype(jnp.bfloat16)
    w2b = w2.astype(jnp.bfloat16)
    b1r = b1.reshape(1, H).astype(jnp.float32)
    b2r = b2.reshape(1, O).astype(jnp.float32)

    tm = _pick_tm(M)
    grid = (pl.cdiv(M, tm),)

    # VMEM budget from actual tile sizes (+50% headroom), floored/capped so it
    # is valid on every generation (defaults are 16/32 MiB scoped; v7x has
    # 64 MiB physical).
    xbytes = x2.dtype.itemsize
    bytes_tiles = 2 * tm * D * xbytes + 2 * tm * O * 4   # double-buffered x/out
    bytes_weights = (D * H + H * O) * 2 + (H + O) * 4    # single-buffered
    bytes_hidden = tm * H * 4                            # fc1/GELU intermediate
    vmem_bytes = int(1.5 * (bytes_tiles + bytes_weights + bytes_hidden))
    vmem_bytes = min(max(vmem_bytes, 16 * 1024 * 1024), 64 * 1024 * 1024)

    cost = pl.CostEstimate(
        flops=2 * M * (D * H + H * O),
        transcendentals=M * H,
        bytes_accessed=(
            M * D * xbytes + (D * H + H * O) * 2 + (H + O) * 4 + M * O * 4
        ),
    )

    weight_mode = pl.Buffered(1)   # grid-invariant operands -> single buffer

    out = pl.pallas_call(
        _ffn_kernel,
        out_shape=jax.ShapeDtypeStruct((M, O), jnp.float32),
        grid=grid,
        in_specs=[
            pl.BlockSpec((tm, D), lambda i: (i, 0)),
            pl.BlockSpec((D, H), lambda i: (0, 0), pipeline_mode=weight_mode),
            pl.BlockSpec((1, H), lambda i: (0, 0), pipeline_mode=weight_mode),
            pl.BlockSpec((H, O), lambda i: (0, 0), pipeline_mode=weight_mode),
            pl.BlockSpec((1, O), lambda i: (0, 0), pipeline_mode=weight_mode),
        ],
        out_specs=pl.BlockSpec((tm, O), lambda i: (i, 0)),
        compiler_params=pltpu.CompilerParams(
            dimension_semantics=("parallel",),
            vmem_limit_bytes=vmem_bytes,
        ),
        cost_estimate=cost,
    )(x2, w1b, b1r, w2b, b2r)

    return out.reshape(*lead, O)


# ----------------------------------------------------------------------------
# Deterministic parameter init (JAX-native layout: W is [in, out])
# ----------------------------------------------------------------------------
def init_ffn_params(key, dim, hidden_dim, out_dim=None):
    if out_dim is None:
        out_dim = dim
    k1, k2, k3, k4 = jax.random.split(key, 4)
    scale1 = 1.0 / math.sqrt(dim)
    scale2 = 1.0 / math.sqrt(hidden_dim)
    return {
        "w1": scale1 * jax.random.normal(k1, (dim, hidden_dim), jnp.float32),
        "b1": scale1 * jax.random.normal(k2, (hidden_dim,), jnp.float32),
        "w2": scale2 * jax.random.normal(k3, (hidden_dim, out_dim), jnp.float32),
        "b2": scale2 * jax.random.normal(k4, (out_dim,), jnp.float32),
    }


# ----------------------------------------------------------------------------
# Pure-JAX reference (for correctness check)
# ----------------------------------------------------------------------------
def feed_forward_ref(x, params):
    h = x @ params["w1"] + params["b1"]
    h = jax.nn.gelu(h, approximate=False)
    return h @ params["w2"] + params["b2"]


if __name__ == "__main__":
    # Module config: FeedForward(dim=128, hidden_dim=256, dropout=0.0)
    dim, hidden_dim, dropout = 128, 256, 0.0
    batch, seq = 2, 64  # M = 128 rows -> 2 "parallel" grid steps of 64 rows

    key = jax.random.PRNGKey(0)
    kx, kp = jax.random.split(key)
    x = jax.random.normal(kx, (batch, seq, dim), jnp.float32)
    params = init_ffn_params(kp, dim, hidden_dim)

    fwd = jax.jit(feed_forward)
    out = jax.block_until_ready(fwd(x, params))

    assert out.shape == (batch, seq, dim), out.shape
    assert bool(jnp.all(jnp.isfinite(out)))

    ref = jax.block_until_ready(jax.jit(feed_forward_ref)(x, params))
    max_err = float(jnp.max(jnp.abs(out - ref)))
    # bf16 MXU operands + approx reciprocal shift numerics at the ~1e-2 level.
    assert bool(jnp.allclose(out, ref, rtol=2e-2, atol=2e-2)), max_err

    print("KERNEL_OK")
</pallas_src>

<mosaic_0001>
module attributes {stable_mosaic.version = 11 : i64} {
  func.func @_ffn_kernel(%arg0: i32, %arg1: memref<64x128xf32, #tpu.memory_space<vmem>>, %arg2: memref<128x256xbf16, #tpu.memory_space<vmem>>, %arg3: memref<1x256xf32, #tpu.memory_space<vmem>>, %arg4: memref<256x128xbf16, #tpu.memory_space<vmem>>, %arg5: memref<1x128xf32, #tpu.memory_space<vmem>>, %arg6: memref<64x128xf32, #tpu.memory_space<vmem>>) attributes {dimension_semantics = [#tpu.dimension_semantics<parallel>], iteration_bounds = array<i64: 2>, scalar_prefetch = 0 : i64, scratch_operands = 0 : i64, tpu.core_type = #tpu.core_type<tc>, window_params = [{transform_indices = @transform_0, window_bounds = array<i64: 64, 128>}, {pipeline_mode = #tpu.pipeline_mode<synchronous>, transform_indices = @transform_1, window_bounds = array<i64: 128, 256>}, {pipeline_mode = #tpu.pipeline_mode<synchronous>, transform_indices = @transform_2, window_bounds = array<i64: 1, 256>}, {pipeline_mode = #tpu.pipeline_mode<synchronous>, transform_indices = @transform_3, window_bounds = array<i64: 256, 128>}, {pipeline_mode = #tpu.pipeline_mode<synchronous>, transform_indices = @transform_4, window_bounds = array<i64: 1, 128>}, {transform_indices = @transform_5, window_bounds = array<i64: 64, 128>}]} {
    %c0 = arith.constant 0 : index
    %c0_0 = arith.constant 0 : index
    %0 = vector.load %arg1[%c0, %c0_0] : memref<64x128xf32, #tpu.memory_space<vmem>>, vector<64x128xf32>
    %1 = arith.truncf %0 : vector<64x128xf32> to vector<64x128xbf16>
    %c0_1 = arith.constant 0 : index
    %c0_2 = arith.constant 0 : index
    %2 = vector.load %arg2[%c0_1, %c0_2] : memref<128x256xbf16, #tpu.memory_space<vmem>>, vector<128x256xbf16>
    %cst = arith.constant dense<0.000000e+00> : vector<64x256xf32>
    %3 = tpu.matmul %1, %2, %cst {dimension_numbers = #tpu.dot_dimension_numbers<[1], [0], [0], [1], [0, 0, 1, 1], [], []>} : vector<64x128xbf16>, vector<128x256xbf16>, vector<64x256xf32> -> vector<64x256xf32>
    %c0_3 = arith.constant 0 : index
    %c0_4 = arith.constant 0 : index
    %4 = vector.load %arg3[%c0_3, %c0_4] : memref<1x256xf32, #tpu.memory_space<vmem>>, vector<1x256xf32>
    %5 = vector.broadcast %4 : vector<1x256xf32> to vector<64x256xf32>
    %6 = arith.addf %3, %5 : vector<64x256xf32>
    %cst_5 = arith.constant 5.000000e-01 : f32
    %7 = vector.broadcast %cst_5 : f32 to vector<64x256xf32>
    %8 = arith.mulf %7, %6 : vector<64x256xf32>
    %cst_6 = arith.constant 0.707106769 : f32
    %9 = vector.broadcast %cst_6 : f32 to vector<64x256xf32>
    %10 = arith.mulf %6, %9 : vector<64x256xf32>
    %cst_7 = arith.constant 0.000000e+00 : f32
    %11 = vector.broadcast %cst_7 : f32 to vector<64x256xf32>
    %12 = arith.cmpf oge, %10, %11 : vector<64x256xf32>
    %cst_8 = arith.constant 1.000000e+00 : f32
    %cst_9 = arith.constant -1.000000e+00 : f32
    %13 = vector.broadcast %cst_8 : f32 to vector<64x256xf32>
    %14 = vector.broadcast %cst_9 : f32 to vector<64x256xf32>
    %15 = arith.select %12, %13, %14 : vector<64x256xi1>, vector<64x256xf32>
    %16 = math.absf %10 : vector<64x256xf32>
    %cst_10 = arith.constant 0.327591091 : f32
    %17 = vector.broadcast %cst_10 : f32 to vector<64x256xf32>
    %18 = arith.mulf %17, %16 : vector<64x256xf32>
    %cst_11 = arith.constant 1.000000e+00 : f32
    %19 = vector.broadcast %cst_11 : f32 to vector<64x256xf32>
    %20 = arith.addf %19, %18 : vector<64x256xf32>
    %21 = tpu.reciprocal %20 {approx = true} : vector<64x256xf32> -> vector<64x256xf32>
    %cst_12 = arith.constant 1.06140542 : f32
    %22 = vector.broadcast %cst_12 : f32 to vector<64x256xf32>
    %23 = arith.mulf %22, %21 : vector<64x256xf32>
    %cst_13 = arith.constant -1.45315206 : f32
    %24 = vector.broadcast %cst_13 : f32 to vector<64x256xf32>
    %25 = arith.addf %23, %24 : vector<64x256xf32>
    %26 = arith.mulf %25, %21 : vector<64x256xf32>
    %cst_14 = arith.constant 1.42141378 : f32
    %27 = vector.broadcast %cst_14 : f32 to vector<64x256xf32>
    %28 = arith.addf %26, %27 : vector<64x256xf32>
    %29 = arith.mulf %28, %21 : vector<64x256xf32>
    %cst_15 = arith.constant -0.284496725 : f32
    %30 = vector.broadcast %cst_15 : f32 to vector<64x256xf32>
    %31 = arith.addf %29, %30 : vector<64x256xf32>
    %32 = arith.mulf %31, %21 : vector<64x256xf32>
    %cst_16 = arith.constant 0.254829586 : f32
    %33 = vector.broadcast %cst_16 : f32 to vector<64x256xf32>
    %34 = arith.addf %32, %33 : vector<64x256xf32>
    %35 = arith.mulf %34, %21 : vector<64x256xf32>
    %cst_17 = arith.constant 0.000000e+00 : f32
    %36 = vector.broadcast %cst_17 : f32 to vector<64x256xf32>
    %37 = arith.subf %36, %16 : vector<64x256xf32>
    %38 = arith.mulf %37, %16 : vector<64x256xf32>
    %39 = math.exp %38 : vector<64x256xf32>
    %40 = arith.mulf %35, %39 : vector<64x256xf32>
    %cst_18 = arith.constant 1.000000e+00 : f32
    %41 = vector.broadcast %cst_18 : f32 to vector<64x256xf32>
    %42 = arith.subf %41, %40 : vector<64x256xf32>
    %43 = arith.mulf %15, %42 : vector<64x256xf32>
    %cst_19 = arith.constant 1.000000e+00 : f32
    %44 = vector.broadcast %cst_19 : f32 to vector<64x256xf32>
    %45 = arith.addf %44, %43 : vector<64x256xf32>
    %46 = arith.mulf %8, %45 : vector<64x256xf32>
    %47 = arith.truncf %46 : vector<64x256xf32> to vector<64x256xbf16>
    %c0_20 = arith.constant 0 : index
    %c0_21 = arith.constant 0 : index
    %48 = vector.load %arg4[%c0_20, %c0_21] : memref<256x128xbf16, #tpu.memory_space<vmem>>, vector<256x128xbf16>
    %cst_22 = arith.constant dense<0.000000e+00> : vector<64x128xf32>
    %49 = tpu.matmul %47, %48, %cst_22 {dimension_numbers = #tpu.dot_dimension_numbers<[1], [0], [0], [1], [0, 0, 1, 1], [], []>} : vector<64x256xbf16>, vector<256x128xbf16>, vector<64x128xf32> -> vector<64x128xf32>
    %c0_23 = arith.constant 0 : index
    %c0_24 = arith.constant 0 : index
    %50 = vector.load %arg5[%c0_23, %c0_24] : memref<1x128xf32, #tpu.memory_space<vmem>>, vector<1x128xf32>
    %51 = vector.broadcast %50 : vector<1x128xf32> to vector<64x128xf32>
    %52 = arith.addf %49, %51 : vector<64x128xf32>
    %c0_25 = arith.constant 0 : index
    %c0_26 = arith.constant 0 : index
    %53 = vector.load %arg6[%c0_25, %c0_26] : memref<64x128xf32, #tpu.memory_space<vmem>>, vector<64x128xf32>
    tpu.vector_store %arg6[%c0_25, %c0_26], %52 {strides = array<i32>} : memref<64x128xf32, #tpu.memory_space<vmem>>, vector<64x128xf32>,
    return
  }
  func.func @transform_0(%arg0: i32) -> (i32, i32) {
    %c0_i32 = arith.constant 0 : i32
    %c0_i32_0 = arith.constant 0 : i32
    return %arg0, %c0_i32 : i32, i32
  }
  func.func @transform_1(%arg0: i32) -> (i32, i32) {
    %c0_i32 = arith.constant 0 : i32
    %c0_i32_0 = arith.constant 0 : i32
    %c0_i32_1 = arith.constant 0 : i32
    return %c0_i32, %c0_i32_0 : i32, i32
  }
  func.func @transform_2(%arg0: i32) -> (i32, i32) {
    %c0_i32 = arith.constant 0 : i32
    %c0_i32_0 = arith.constant 0 : i32
    %c0_i32_1 = arith.constant 0 : i32
    return %c0_i32, %c0_i32_0 : i32, i32
  }
  func.func @transform_3(%arg0: i32) -> (i32, i32) {
    %c0_i32 = arith.constant 0 : i32
    %c0_i32_0 = arith.constant 0 : i32
    %c0_i32_1 = arith.constant 0 : i32
    return %c0_i32, %c0_i32_0 : i32, i32
  }
  func.func @transform_4(%arg0: i32) -> (i32, i32) {
    %c0_i32 = arith.constant 0 : i32
    %c0_i32_0 = arith.constant 0 : i32
    %c0_i32_1 = arith.constant 0 : i32
    return %c0_i32, %c0_i32_0 : i32, i32
  }
  func.func @transform_5(%arg0: i32) -> (i32, i32) {
    %c0_i32 = arith.constant 0 : i32
    %c0_i32_0 = arith.constant 0 : i32
    return %arg0, %c0_i32 : i32, i32
  }
}

</mosaic_0001>

<bundles_post_ra>
// kernel: feed_forward.1
= control target key start
LH: loop header
LB: loop body
LE: loop exit
PB: predicated region body
PF: predicated region fallthrough
CT: control target
= control target key end

     0   :  { %10 = vsyncpa [#allocation3], 0  ;;  %s2126_s0 = inlined_call_operand.vmem [shape: f32[128,128], index: 0, kind: input, shape index: {}]   ;;  %s2127_s1 = inlined_call_operand.vmem [shape: bf16[128,256], index: 1, kind: input, shape index: {}]   ;;  %s2128_s2 = inlined_call_operand.vmem [shape: f32[1,256], index: 2, kind: input, shape index: {}]   ;;  %s2129_s3 = inlined_call_operand.vmem [shape: bf16[256,128], index: 3, kind: input, shape index: {}]   ;;  %s2130_s4 = inlined_call_operand.vmem [shape: f32[1,128], index: 4, kind: input, shape index: {}]   ;;  %s2131_s5 = inlined_call_operand.hbm [shape: f32[128,128], index: 5, kind: output, shape index: {}]  }
   0x1   :  { %12 = vsyncpa [#allocation3 + $0x1], 0  ;;  %s1460_s18 = smov 0   ;;  %s1462_s19 = smov 0  }
   0x2   :  { %s1464_s20 = smov 0   ;;  %s1466_s21 = smov 0  }
   0x3 LB: > { %s1481_s22 = sadd.s32 4294967295, %s1423_s21   ;;  %s1128_s23 = sadd.s32 4294967294, %s1423_s21   ;;  %s1423_s21 = sphi %s1466_s21, %s2143_s21   ;;  %s1419_s20 = sphi %s1464_s20, %s2142_s20   ;;  %s1415_s19 = sphi %s1462_s19, %s2141_s19   ;;  %s1411_s18 = sphi %s1460_s18, %s2140_s18  }
   0x4   : > { %s1485_s24 = sadd.s32 1, %s1423_s21   ;;  %s135_s25 = sadd.s32 1, %s1419_s20 }
   0x5   : > { %s132_s26 = ssub.s32 %s1423_s21, %s1485_s24  ;;  %p145_p0 = scmp.ne.s32.totalorder %s1419_s20, %s1415_s19 }
   0x6   : > { %p133_p1 = scmp.eq.s32.totalorder %s132_s26, 0  ;;  %p146_p2 = scmp.eq.s32.totalorder %s1481_s22, 1 }
   0x7   : > { %p151_p3 = scmp.ne.s32.totalorder %s1415_s19, %s1411_s18  ;;  %p152_p4 = scmp.eq.s32.totalorder %s1128_s23, 1 }
   0x8   : > { %s1496_s27 = scalar_select %p133_p1, %s1419_s20, %s135_s25  }
   0x9   : > { %p1498_p5 = por %p146_p2, %p145_p0  ;;  %p1502_p6 = por %p152_p4, %p151_p3 }
   0xa   : > { %p1131_p7 = scmp.ge.s32.totalorder %s1423_s21, 1  ;;  %p191_p8 = scmp.lt.s32.totalorder %s1423_s21, 3 }
   0xc   : > { %p192_p9 = pnand %p1131_p7, %p191_p8 }
   0xe   : > { %195 = sbr.rel (%p192_p9) target bundleno = 635 (0x27b), region = 40 }
  0x15   : > { %v1257_v0 = vld [vmem:[%s2127_s1 + $0x4] ss:$8 sps:$4 sm:$0xff]   ;;  %v1259_v1 = vld [vmem:[%s2127_s1] ss:$8 sps:$4 sm:$0xff]   ;;  %v1425_v2 = vmov 0   ;;  %s1133_s11 = sshll.u32 %s1481_s22, 3  ;;  %v257_v45 = vlaneseq }
  0x16   : > { %379 = vmatprep.mubr.bf16.mxu0 %v1425_v2  ;;  %347 = vmatprep.subr.bf16.mxu0 %v1257_v0  ;;  %v1260_v3 = vld [vmem:[%s2127_s1 + $0x14] ss:$8 sps:$4 sm:$0xff]   ;;  %v1262_v4 = vld [vmem:[%s2127_s1 + $0x10] ss:$8 sps:$4 sm:$0xff]   ;;  %v1263_v5 = vld [vmem:[%s2127_s1 + $0x24] ss:$8 sps:$4 sm:$0xff]  }
  0x17   : > { %348 = vmatpush1.bf16.msra.mxu0 %v1259_v1  ;;  %p220_p10 = scmp.lt.s32.totalorder %s1133_s11, 15  ;;  %v1265_v6 = vld [vmem:[%s2127_s1 + $0x20] ss:$8 sps:$4 sm:$0xff]   ;;  %v1266_v7 = vld [vmem:[%s2127_s1 + $0x34] ss:$8 sps:$4 sm:$0xff]   ;;  %v258_v46 = vshrl.u32 %v257_v45, 7 }
  0x18   : > { %349 = vmatprep.subr.bf16.mxu0 %v1260_v3  ;;  %v1268_v8 = vld [vmem:[%s2127_s1 + $0x30] ss:$8 sps:$4 sm:$0xff]   ;;  %v1269_v9 = vld [vmem:[%s2127_s1 + $0x44] ss:$8 sps:$4 sm:$0xff]   ;;  %v1271_v10 = vld [vmem:[%s2127_s1 + $0x40] ss:$8 sps:$4 sm:$0xff]  }
  0x19   : > { %s2145_s11 = smov (!%p220_p10, %s1133_s11), 15  ;;  %v1272_v11 = vld [vmem:[%s2127_s1 + $0x54] ss:$8 sps:$4 sm:$0xff]   ;;  %v1274_v12 = vld [vmem:[%s2127_s1 + $0x50] ss:$8 sps:$4 sm:$0xff]   ;;  %v1281_v29 = vld [vmem:[%s2129_s3 + $0x40] sm:$0xff]  }
  0x1a   : > { %s1134_s10 = sshll.u32 %s2145_s11, 3  ;;  %v1275_v13 = vld [vmem:[%s2127_s1 + $0x64] ss:$8 sps:$4 sm:$0xff]   ;;  %v1277_v14 = vld [vmem:[%s2127_s1 + $0x60] ss:$8 sps:$4 sm:$0xff]   ;;  %1174 = vmatprep.subr.bf16.mxu1 %v1281_v29  ;;  %v1285_v33 = vld [vmem:[%s2129_s3 + $0x50] sm:$0xff]  }
  0x1b   : > { %350 = vmatpush1.bf16.msra.mxu0 %v1262_v4  ;;  %v1278_v15 = vld [vmem:[%s2127_s1 + $0x74] ss:$8 sps:$4 sm:$0xff]   ;;  %s223_s7 = scalar_lea.vmem %s2126_s0, %s1134_s10  ;;  %v1280_v16 = vld [vmem:[%s2127_s1 + $0x70] ss:$8 sps:$4 sm:$0xff]   ;;  %v1282_v30 = vld [vmem:[%s2129_s3] sm:$0xff]   ;;  %v259_v47 = vsub.s32 0, %v258_v46 }
  0x1c   : > { %351 = vmatprep.subr.bf16.mxu0 %v1263_v5  ;;  %v227_v17 = vld [vmem:[%s223_s7] sm:$0xff]  ;;  %v228_v18 = vld [vmem:[%s223_s7 + $0x8] sm:$0xff]  ;;  %v229_v20 = vld [vmem:[%s223_s7 + $0x10] sm:$0xff]  ;;  %1175 = vmatpush3.bf16.msra.mxu1 %v1282_v30  ;;  %v263_v49 = vsub.s32 1, %v258_v46  ;;  %s216_s13 = sand.u32 1, %s1415_s19   ;;  %s1173_s23 = sshll.u32 %s1481_s22, 10 }
  0x1d   : > { %v235_v19 = vpack.c.bf16 %v228_v18, %v227_v17  ;;  %v230_v21 = vld [vmem:[%s223_s7 + $0x18] sm:$0xff]  ;;  %v231_v23 = vld [vmem:[%s223_s7 + $0x20] sm:$0xff]  ;;  %v232_v24 = vld [vmem:[%s223_s7 + $0x28] sm:$0xff]  ;;  %s1132_s14 = sshll.u32 %s216_s13, 6  ;;  %s2077_s30 = scalar_lea.hbm %s2131_s5, %s1173_s23 }
  0x1e   : > { %v236_v22 = vpack.c.bf16 %v230_v21, %v229_v20  ;;  %v237_v25 = vpack.c.bf16 %v232_v24, %v231_v23  ;;  %v233_v26 = vld [vmem:[%s223_s7 + $0x30] sm:$0xff]  ;;  %v234_v27 = vld [vmem:[%s223_s7 + $0x38] sm:$0xff]  ;;  %v1283_v31 = vld [vmem:[%s2129_s3 + $0x48] sm:$0xff]   ;;  %s2064_s17 = scalar_lea.vmem [#allocation2], %s1132_s14  ;;  %s2085_s6 = scalar_lea.sflag [#allocation3], %s216_s13 }
  0x1f   : > { %352 = vmatpush1.bf16.msra.mxu0 %v1265_v6  ;;  %v238_v28 = vpack.c.bf16 %v234_v27, %v233_v26  ;;  %v1284_v32 = vld [vmem:[%s2129_s3 + $0x8] sm:$0xff]   ;;  %1176 = vmatprep.subr.bf16.mxu1 %v1283_v31  ;;  %v1286_v34 = vld [vmem:[%s2129_s3 + $0x10] sm:$0xff]   ;;  %v1287_v35 = vld [vmem:[%s2129_s3 + $0x58] sm:$0xff]   ;;  %s1066_s25 = sshll.u32 %s2064_s17, 4  ;;  %s1427_s7 = smov [#allocation2]   ;;  %s2079_s25 = int_to_ptr.vmem [resolvable:$true] %s1066_s25 }
  0x20   : > { %353 = vmatprep.subr.bf16.mxu0 %v1266_v7  ;;  %1177 = vmatpush3.bf16.msra.mxu1 %v1284_v32  ;;  %v1288_v36 = vld [vmem:[%s2129_s3 + $0x18] sm:$0xff]   ;;  %v1289_v37 = vld [vmem:[%s2129_s3 + $0x60] sm:$0xff]   ;;  %v1291_v39 = vld [vmem:[%s2129_s3 + $0x68] sm:$0xff]   ;;  %s1361_s22 = scalar_lea.vmem %s2079_s25, 1024  ;;  %s1365_s8 = sshll.u32 %s1427_s7, 4  ;;  %s1366_s8 = int_to_ptr.vmem [resolvable:$false] %s1365_s8 }
  0x21   : > { %1178 = vmatprep.subr.bf16.mxu1 %v1285_v33  ;;  %v1290_v38 = vld [vmem:[%s2129_s3 + $0x20] sm:$0xff]   ;;  %v1292_v40 = vld [vmem:[%s2129_s3 + $0x28] sm:$0xff]   ;;  %v1293_v41 = vld [vmem:[%s2129_s3 + $0x70] sm:$0xff]   ;;  %p1362_p11 = scmp.ne.s32.totalorder %s2079_s25, %s1361_s22  ;;  %s1367_s9 = scalar_lea.vmem %s1366_s8, 2048 }
  0x22   : > { %v1294_v42 = vld [vmem:[%s2129_s3 + $0x30] sm:$0xff]   ;;  %v1295_v43 = vld [vmem:[%s2129_s3 + $0x78] sm:$0xff]   ;;  %v255_v48 = vld [vmem:[%s2128_s2] sm:$0x3]  ;;  %p1368_p0 = scmp.lt.s32.totalorder %s2079_s25, %s1366_s8  ;;  %p1369_p1 = scmp.lt.s32.totalorder %s1367_s9, %s1361_s22 }
  0x23   : > { %354 = vmatpush1.bf16.msra.mxu0 %v1268_v8  ;;  %v1296_v44 = vld [vmem:[%s2129_s3 + $0x38] sm:$0xff]   ;;  %v1611_v50 = vrot.slane %v255_v48, %v259_v47  ;;  %v1613_v51 = vrot.slane %v255_v48, %v263_v49  ;;  %v2132_v47 = vmov -1.0   ;;  %p1363_p12 = pnand %p1362_p11, %p1498_p5 }
  0x24   : > { %355 = vmatprep.subr.bf16.mxu0 %v1269_v9  ;;  %1179 = vmatpush3.bf16.msra.mxu1 %v1286_v34  ;;  %p1370_p2 = por %p1369_p1, %p1368_p0 }
  0x25   : > { %1180 = vmatprep.subr.bf16.mxu1 %v1287_v35  ;;  %p1364_p13 = pneg %p1363_p12 }
  0x27   : > { %356 = vmatpush1.bf16.msra.mxu0 %v1271_v10  ;;  %p1371_p3 = pnand %p1370_p2, %p1364_p13 }
  0x28   : > { %357 = vmatprep.subr.bf16.mxu0 %v1272_v11  ;;  %1181 = vmatpush3.bf16.msra.mxu1 %v1288_v36 }
  0x29   : > { %1182 = vmatprep.subr.bf16.mxu1 %v1289_v37 }
  0x2b   : > { %358 = vmatpush1.bf16.msra.mxu0 %v1274_v12 }
  0x2c   : > { %359 = vmatprep.subr.bf16.mxu0 %v1275_v13  ;;  %1183 = vmatpush3.bf16.msra.mxu1 %v1290_v38 }
  0x2d   : > { %1184 = vmatprep.subr.bf16.mxu1 %v1291_v39 }
  0x2f   : > { %360 = vmatpush1.bf16.msra.mxu0 %v1277_v14 }
  0x30   : > { %361 = vmatprep.subr.bf16.mxu0 %v1278_v15  ;;  %1185 = vmatpush3.bf16.msra.mxu1 %v1292_v40 }
  0x31   : > { %1186 = vmatprep.subr.bf16.mxu1 %v1293_v41 }
  0x33   : > { %362 = vmatpush1.bf16.msra.mxu0 %v1280_v16 }
  0x34   : > { %1187 = vmatpush3.bf16.msra.mxu1 %v1294_v42 }
  0x35   : > { %1188 = vmatprep.subr.bf16.mxu1 %v1295_v43 }
  0x36   : > { %380 = vmatmul.mubr.bf16.vlgmr.msra.gmra.mrb[0].mxu0 %v235_v19 }
  0x37   : > { %389 = vmatprep.mubr.bf16.mxu0 %v1425_v2 }
  0x38   : > { %1189 = vmatpush3.bf16.msra.mxu1 %v1296_v44 }
  0x3e   : > { %390 = vmatmul.mubr.bf16.gmra.mrb[4].mxu0 %v236_v22 }
  0x3f   : > { %399 = vmatprep.mubr.bf16.mxu0 %v1425_v2 }
  0x46   : > { %400 = vmatmul.mubr.bf16.gmra.mrb[8].mxu0 %v237_v25 }
  0x47   : > { %409 = vmatprep.mubr.bf16.mxu0 %v1425_v2 }
  0x4e   : > { %410 = vmatmul.mubr.bf16.gmra.mrb[12].mxu0 %v238_v28 }
 0x109   : > { %v381_v52 = vpop.f32.mrb[0].mxu0 }
 0x10a   : > { %v1616_v53 = vadd.f32 %v381_v52, %v1611_v50  ;;  %v383_v54 = vpop.f32.mrb[1].mxu0 }
 0x10b   : > { %v1619_v55 = vadd.f32 %v383_v54, %v1613_v51  ;;  %v385_v56 = vpop.f32.mrb[2].mxu0 }
 0x10c   : > { %v436_v57 = vmul.f32 0.70710677, %v1616_v53  ;;  %v386_v58 = vadd.f32 %v385_v56, %v1611_v50  ;;  %v387_v59 = vpop.f32.mrb[3].mxu0  ;;  %v1677_v46 = vmul.f32 0.5, %v1616_v53 }
 0x10d   : > { %v1624_v60 = vmul.f32 0.70710677, %v1619_v55  ;;  %v1628_v2 = vadd.f32 %v387_v59, %v1613_v51 }
 0x10e   : > { %v484_v61 = vand.u32 2147483647, %v436_v57  ;;  %v438_v62 = vmul.f32 0.70710677, %v386_v58  ;;  %vm452_vm0 = vcmp.ge.f32.partialorder %v436_v57, 0.0  ;;  %v1683_v49 = vmul.f32 0.5, %v386_v58 }
 0x10f   : > { %v485_v0 = vand.u32 2147483647, %v1624_v60  ;;  %2137 = vst [vmem:[#allocation5_spill] sm:$0xff] %v1628_v2  ;;  %v1631_v10 = vmul.f32 0.70710677, %v1628_v2  ;;  %v1681_v48 = vsel %vm452_vm0, 1.0, %v2132_v47 }
 0x110   : > { %v500_v63 = vmul.f32 0.3275911, %v484_v61  ;;  %v486_v1 = vand.u32 2147483647, %v438_v62  ;;  %v692_v3 = vsub.f32 0.0, %v484_v61  ;;  %vm454_vm1 = vcmp.ge.f32.partialorder %v438_v62, 0.0 }
 0x111   : > { %v391_v6 = vpop.f32.mrb[4].mxu0  ;;  %v693_v8 = vsub.f32 0.0, %v485_v0  ;;  %v501_v13 = vmul.f32 0.3275911, %v485_v0  ;;  %v487_v20 = vand.u32 2147483647, %v1631_v10 }
 0x112   : > { %v516_v4 = vadd.f32 1.0, %v500_v63  ;;  %v502_v5 = vmul.f32 0.3275911, %v486_v1  ;;  %v393_v7 = vpop.f32.mrb[5].mxu0  ;;  %v708_v12 = vmul.f32 %v692_v3, %v484_v61  ;;  %v392_v15 = vadd.f32 %v391_v6, %v1611_v50 }
 0x113   : > { %v395_v11 = vpop.f32.mrb[6].mxu0  ;;  %v1635_v16 = vadd.f32 %v393_v7, %v1613_v51  ;;  %v694_v17 = vsub.f32 0.0, %v486_v1  ;;  %v709_v19 = vmul.f32 %v693_v8, %v485_v0  ;;  %v517_v23 = vadd.f32 1.0, %v501_v13 }
 0x114   : > { %1297 = vrcp.f32 %v516_v4  ;;  %v518_v9 = vadd.f32 1.0, %v502_v5  ;;  %v397_v14 = vpop.f32.mrb[7].mxu0  ;;  %v1638_v18 = vadd.f32 %v395_v11, %v1611_v50  ;;  %v1641_v21 = vmul.f32 0.70710677, %v392_v15 }
 0x115   : > { %v724_v22 = vmul.f32 1.442695, %v708_v12  ;;  %v1644_v24 = vmul.f32 0.70710677, %v1635_v16  ;;  %v726_v31 = vmul.f32 1.442695, %v709_v19  ;;  %v710_v32 = vmul.f32 %v694_v17, %v486_v1 }
 0x116   : > { %1299 = vrcp.f32 %v518_v9  ;;  %v1647_v26 = vand.u32 2147483647, %v1641_v21  ;;  %v1650_v27 = vmul.f32 0.70710677, %v1638_v18  ;;  %v503_v35 = vmul.f32 0.3275911, %v487_v20 }
 0x117   : > { %v1655_v29 = vand.u32 2147483647, %v1644_v24  ;;  %1301 = vrcp.f32 %v517_v23  ;;  %v695_v39 = vsub.f32 0.0, %v487_v20  ;;  %v1669_v41 = vadd.f32 %v397_v14, %v1613_v51 }
 0x118   : > { %v504_v33 = vmul.f32 0.3275911, %v1647_v26  ;;  %v1664_v37 = vand.u32 2147483647, %v1650_v27  ;;  %1303 = vpow2.f32 %v724_v22  ;;  %v1687_v54 = vsel %vm454_vm1, 1.0, %v2132_v47 }
 0x119   : > { %v401_v25 = vpop.f32.mrb[8].mxu0  ;;  %v505_v36 = vmul.f32 0.3275911, %v1655_v29  ;;  %v728_v53 = vmul.f32 1.442695, %v710_v32  ;;  %v711_v63 = vmul.f32 %v695_v39, %v487_v20  ;;  %v519_v1 = vadd.f32 1.0, %v503_v35 }
 0x11a   : > { %v1652_v28 = vpop.f32.mrb[9].mxu0  ;;  %v520_v40 = vadd.f32 1.0, %v504_v33  ;;  %v506_v44 = vmul.f32 0.3275911, %v1664_v37  ;;  %v1674_v45 = vadd.f32 %v401_v25, %v1611_v50  ;;  %v1694_v57 = vmul.f32 0.70710677, %v1669_v41 }
 0x11b   : > { %v1657_v30 = vpop.f32.mrb[10].mxu0  ;;  %v521_v43 = vadd.f32 1.0, %v505_v36  ;;  %v1705_v5 = vmul.f32 0.5, %v392_v15  ;;  %v696_v6 = vsub.f32 0.0, %v1647_v26  ;;  %vm456_vm2 = vcmp.ge.f32.partialorder %v1641_v21, 0.0 }
 0x11c   : > { %v1660_v34 = vpop.f32.mrb[11].mxu0  ;;  %1305 = vrcp.f32 %v520_v40  ;;  %v522_v56 = vadd.f32 1.0, %v506_v44  ;;  %v1701_v3 = vmul.f32 0.70710677, %v1674_v45  ;;  %v1709_v7 = vand.u32 2147483647, %v1694_v57 }
 0x11d   : > { %1307 = vrcp.f32 %v521_v43  ;;  %v1715_v12 = vmul.f32 0.5, %v1635_v16  ;;  %v730_v13 = vmul.f32 1.442695, %v711_v63  ;;  %v697_v14 = vsub.f32 0.0, %v1655_v29 }
 0x11e   : > { %v1666_v38 = vpop.eup %1297  ;;  %1309 = vpow2.f32 %v726_v31  ;;  %v507_v15 = vmul.f32 0.3275911, %v1709_v7  ;;  %v1724_v22 = vmul.f32 0.5, %v1638_v18  ;;  %v1727_v21 = vand.u32 2147483647, %v1701_v3 }
 0x11f   : > { %v548_v42 = vmul.f32 1.0614054, %v1666_v38  ;;  %1311 = vrcp.f32 %v522_v56  ;;  %v1732_v23 = vsel %vm456_vm2, 1.0, %v2132_v47  ;;  %v712_v25 = vmul.f32 %v696_v6, %v1647_v26 }
 0x120   : > { %v1691_v61 = vpop.eup %1299  ;;  %1313 = vpow2.f32 %v728_v53  ;;  %v523_v31 = vadd.f32 1.0, %v507_v15  ;;  %v1737_v32 = vadd.f32 %v1652_v28, %v1613_v51  ;;  %v508_v18 = vmul.f32 0.3275911, %v1727_v21 }
 0x121   : > { %v564_v52 = vadd.f32 -1.4531521, %v548_v42  ;;  %v1689_v59 = vpop.f32.mrb[12].mxu0  ;;  %v550_v62 = vmul.f32 1.0614054, %v1691_v61  ;;  %v1719_v17 = vpop.eup %1301  ;;  %1315 = vrcp.f32 %v519_v1  ;;  %vm457_vm3 = vcmp.ge.f32.partialorder %v1644_v24, 0.0 }
 0x122   : > { %v1696_v58 = vpop.f32.mrb[13].mxu0  ;;  %v1729_v16 = vpop.eup %1303  ;;  %v713_v39 = vmul.f32 %v697_v14, %v1655_v29  ;;  %vm458_vm4 = vcmp.ge.f32.partialorder %v1650_v27, 0.0  ;;  %1317 = vrcp.f32 %v523_v31  ;;  %v698_v42 = vsub.f32 0.0, %v1664_v37 }
 0x123   : > { %v580_v0 = vmul.f32 %v1666_v38, %v564_v52  ;;  %v1703_v4 = vpop.f32.mrb[14].mxu0  ;;  %v566_v11 = vadd.f32 -1.4531521, %v550_v62  ;;  %v524_v43 = vadd.f32 1.0, %v508_v18  ;;  %1319 = vpow2.f32 %v730_v13 }
 0x124   : > { %v1711_v8 = vpop.f32.mrb[15].mxu0  ;;  %v732_v52 = vmul.f32 1.442695, %v712_v25  ;;  %v1754_v29 = vmul.f32 0.70710677, %v1737_v32  ;;  %v1762_v1 = vsel %vm457_vm3, 1.0, %v2132_v47  ;;  %v714_v15 = vmul.f32 %v698_v42, %v1664_v37 }
 0x125   : > { %v596_v9 = vadd.f32 1.4214138, %v580_v0  ;;  %v582_v20 = vmul.f32 %v1691_v61, %v566_v11  ;;  %1321 = vrcp.f32 %v524_v43  ;;  %v1767_v11 = vsel %vm458_vm4, 1.0, %v2132_v47 }
 0x126   : > { %v1740_v36 = vpop.eup %1305  ;;  %1323 = vpow2.f32 %v732_v52  ;;  %v1777_v25 = vmul.f32 0.5, %v1674_v45  ;;  %v1780_v27 = vand.u32 2147483647, %v1754_v29  ;;  %v699_v37 = vsub.f32 0.0, %v1709_v7 }
 0x127   : > { %v612_v19 = vmul.f32 %v1666_v38, %v596_v9  ;;  %v598_v35 = vadd.f32 1.4214138, %v582_v20  ;;  %v1745_v26 = vpop.eup %1307  ;;  %v552_v28 = vmul.f32 1.0614054, %v1740_v36  ;;  %v734_v9 = vmul.f32 1.442695, %v713_v39 }
 0x128   : > { %v1750_v44 = vpop.eup %1309  ;;  %v553_v56 = vmul.f32 1.0614054, %v1745_v26  ;;  %v736_v42 = vmul.f32 1.442695, %v714_v15  ;;  %vm459_vm5 = vcmp.ge.f32.partialorder %v1694_v57, 0.0  ;;  %vm460_vm6 = vcmp.ge.f32.partialorder %v1701_v3, 0.0 }
 0x129   : > { %v628_v33 = vadd.f32 -0.28449672, %v612_v19  ;;  %v614_v40 = vmul.f32 %v1691_v61, %v598_v35  ;;  %v568_v0 = vadd.f32 -1.4531521, %v552_v28  ;;  %v1757_v62 = vpop.eup %1311  ;;  %v1773_v19 = vmul.f32 0.5, %v1669_v41 }
 0x12a   : > { %v569_v6 = vadd.f32 -1.4531521, %v553_v56  ;;  %v554_v14 = vmul.f32 1.0614054, %v1757_v62  ;;  %v1314_v20 = vpop.eup %1313  ;;  %1325 = vpow2.f32 %v734_v9  ;;  %v509_v41 = vmul.f32 0.3275911, %v1780_v27 }
 0x12b   : > { %v644_v53 = vmul.f32 %v1666_v38, %v628_v33  ;;  %v630_v63 = vadd.f32 -0.28449672, %v614_v40  ;;  %v584_v13 = vmul.f32 %v1740_v36, %v568_v0  ;;  %v1785_v40 = vpop.eup %1315  ;;  %v1802_v57 = vsel %vm459_vm5, 1.0, %v2132_v47 }
 0x12c   : > { %v585_v24 = vmul.f32 %v1745_v26, %v569_v6  ;;  %v570_v18 = vadd.f32 -1.4531521, %v554_v14  ;;  %v1790_v43 = vpop.eup %1317  ;;  %v525_v56 = vadd.f32 1.0, %v509_v41  ;;  %v715_v15 = vmul.f32 %v699_v37, %v1709_v7 }
 0x12d   : > { %v660_v31 = vadd.f32 0.2548296, %v644_v53  ;;  %v646_v33 = vmul.f32 %v1691_v61, %v630_v63  ;;  %v600_v35 = vadd.f32 1.4214138, %v584_v13  ;;  %v1796_v53 = vadd.f32 %v1657_v30, %v1611_v50  ;;  %v1799_v13 = vpop.eup %1319 }
 0x12e   : > { %v601_v39 = vadd.f32 1.4214138, %v585_v24  ;;  %v586_v45 = vmul.f32 %v1757_v62, %v570_v18  ;;  %v555_v14 = vmul.f32 1.0614054, %v1790_v43  ;;  %1327 = vrcp.f32 %v525_v56 }
 0x12f   : > { %v616_v28 = vmul.f32 %v1740_v36, %v600_v35  ;;  %v676_v63 = vmul.f32 %v1666_v38, %v660_v31  ;;  %v662_v0 = vadd.f32 0.2548296, %v646_v33  ;;  %v1806_v3 = vpop.eup %1321  ;;  %v1810_v38 = vsel %vm460_vm6, 1.0, %v2132_v47 }
 0x130   : > { %v617_v52 = vmul.f32 %v1745_v26, %v601_v39  ;;  %v602_v9 = vadd.f32 1.4214138, %v586_v45  ;;  %v700_v31 = vsub.f32 0.0, %v1727_v21  ;;  %1329 = vpow2.f32 %v736_v42 }
 0x131   : > { %v632_v6 = vadd.f32 -0.28449672, %v616_v28  ;;  %v571_v33 = vadd.f32 -1.4531521, %v555_v14  ;;  %v556_v35 = vmul.f32 1.0614054, %v1806_v3  ;;  %v756_v7 = vmul.f32 %v1729_v16, %v676_v63  ;;  %v1324_v28 = vpop.eup %1323 }
 0x132   : > { %v633_v24 = vadd.f32 -0.28449672, %v617_v52  ;;  %v618_v30 = vmul.f32 %v1757_v62, %v602_v9  ;;  %v1815_v18 = vmul.f32 0.70710677, %v1796_v53  ;;  %v678_v39 = vmul.f32 %v1691_v61, %v662_v0 }
 0x133   : > { %v648_v37 = vmul.f32 %v1740_v36, %v632_v6  ;;  %v587_v45 = vmul.f32 %v1790_v43, %v571_v33  ;;  %v738_v52 = vmul.f32 1.442695, %v715_v15  ;;  %v572_v56 = vadd.f32 -1.4531521, %v556_v35 }
 0x134   : > { %v634_v41 = vadd.f32 -0.28449672, %v618_v30  ;;  %v408_v42 = vadd.f32 %v1660_v34, %v1613_v51  ;;  %v649_v9 = vmul.f32 %v1745_v26, %v633_v24  ;;  %v716_v14 = vmul.f32 %v700_v31, %v1727_v21  ;;  %v1326_v16 = vpop.eup %1325 }
 0x135   : > { %v701_v47 = vsub.f32 0.0, %v1780_v27  ;;  %v1828_v61 = vadd.f32 %v1689_v59, %v1611_v50  ;;  %v603_v0 = vadd.f32 1.4214138, %v587_v45  ;;  %v588_v6 = vmul.f32 %v1806_v3, %v572_v56 }
 0x136   : > { %v650_v63 = vmul.f32 %v1757_v62, %v634_v41  ;;  %v1833_v15 = vand.u32 2147483647, %v1815_v18  ;;  %v772_v34 = vsub.f32 1.0, %v756_v7  ;;  %v758_v30 = vmul.f32 %v1314_v20, %v678_v39 }
 0x137   : > { %v664_v24 = vadd.f32 0.2548296, %v648_v37  ;;  %v1836_v21 = vmul.f32 0.5, %v1737_v32  ;;  %v619_v31 = vmul.f32 %v1790_v43, %v603_v0  ;;  %1331 = vpow2.f32 %v738_v52 }
 0x138   : > { %v604_v59 = vadd.f32 1.4214138, %v588_v6  ;;  %v510_v33 = vmul.f32 0.3275911, %v1833_v15  ;;  %v665_v35 = vadd.f32 0.2548296, %v649_v9  ;;  %v717_v45 = vmul.f32 %v701_v47, %v1780_v27  ;;  %v1842_v56 = vpop.eup %1327 }
 0x139   : > { %v740_v41 = vmul.f32 1.442695, %v716_v14  ;;  %vm461_vm7 = vcmp.ge.f32.partialorder %v1754_v29, 0.0  ;;  %v666_v7 = vadd.f32 0.2548296, %v650_v63  ;;  %v788_v37 = vmul.f32 %v772_v34, %v1681_v48 }
 0x13a   : > { %v635_v20 = vadd.f32 -0.28449672, %v619_v31  ;;  %v620_v39 = vmul.f32 %v1806_v3, %v604_v59  ;;  %v526_v32 = vadd.f32 1.0, %v510_v33  ;;  %v774_v0 = vsub.f32 1.0, %v758_v30  ;;  %v1330_v9 = vpop.eup %1329 }
 0x13b   : > { %v680_v52 = vmul.f32 %v1740_v36, %v664_v24  ;;  %v557_v6 = vmul.f32 1.0614054, %v1842_v56  ;;  %v1849_v47 = vmul.f32 0.70710677, %v408_v42  ;;  %v681_v27 = vmul.f32 %v1745_v26, %v665_v35 }
 0x13c   : > { %v651_v14 = vmul.f32 %v1790_v43, %v635_v20  ;;  %v636_v2 = vadd.f32 -0.28449672, %v620_v39  ;;  %1333 = vrcp.f32 %v526_v32  ;;  %v1853_v31 = vmul.f32 0.5, %v1796_v53 }
 0x13d   : > { %1335 = vpow2.f32 %v740_v41  ;;  %v573_v63 = vadd.f32 -1.4531521, %v557_v6  ;;  %v682_v48 = vmul.f32 %v1757_v62, %v666_v7  ;;  %v742_v30 = vmul.f32 1.442695, %v717_v45 }
 0x13e   : > { %v667_v34 = vadd.f32 0.2548296, %v651_v14  ;;  %v652_v36 = vmul.f32 %v1806_v3, %v636_v2  ;;  %v790_v24 = vmul.f32 %v774_v0, %v1687_v54  ;;  %v2138_v59 = vmov -1.0  }
 0x13f   : > { %v1861_v33 = vsel %vm461_vm7, 1.0, %v2138_v59  ;;  %v589_v26 = vmul.f32 %v1842_v56, %v573_v63  ;;  %v1864_v35 = vmul.f32 0.5, %v408_v42  ;;  %v804_v41 = vadd.f32 1.0, %v788_v37 }
 0x140   : > { %v760_v53 = vmul.f32 %v1324_v28, %v680_v52  ;;  %v668_v20 = vadd.f32 0.2548296, %v652_v36  ;;  %v495_v62 = vand.u32 2147483647, %v1849_v47  ;;  %v761_v7 = vmul.f32 %v1326_v16, %v681_v27 }
 0x141   : > { %v683_v2 = vmul.f32 %v1790_v43, %v667_v34  ;;  %v605_v45 = vadd.f32 1.4214138, %v589_v26  ;;  %v1869_v54 = vmul.f32 0.70710677, %v1828_v61  ;;  %v1332_v39 = vpop.eup %1331  ;;  %v762_v29 = vmul.f32 %v1330_v9, %v682_v48 }
 0x142   : > { %1337 = vpow2.f32 %v742_v30  ;;  %v702_v32 = vsub.f32 0.0, %v1833_v15  ;;  %v511_v0 = vmul.f32 0.3275911, %v495_v62  ;;  %v806_v42 = vadd.f32 1.0, %v790_v24 }
 0x143   : > { %v621_v37 = vmul.f32 %v1842_v56, %v605_v45  ;;  %vm462_vm8 = vcmp.ge.f32.partialorder %v1815_v18, 0.0  ;;  %v496_v28 = vand.u32 2147483647, %v1869_v54  ;;  %v1876_v16 = vmul.f32 %v804_v41, %v1677_v46 }
 0x144   : > { %v776_v43 = vsub.f32 1.0, %v760_v53  ;;  %v684_v52 = vmul.f32 %v1806_v3, %v668_v20  ;;  %v527_v6 = vadd.f32 1.0, %v511_v0  ;;  %v777_v14 = vsub.f32 1.0, %v761_v7 }
 0x145   : > { %v763_v9 = vmul.f32 %v1332_v39, %v683_v2  ;;  %v637_v27 = vadd.f32 -0.28449672, %v621_v37  ;;  %v512_v63 = vmul.f32 0.3275911, %v496_v28  ;;  %v778_v34 = vsub.f32 1.0, %v762_v29 }
 0x146   : > { %v1879_v48 = vpop.eup %1333  ;;  %v1882_v36 = vsel %vm462_vm8, 1.0, %v2138_v59  ;;  %v718_v18 = vmul.f32 %v702_v32, %v1833_v15  ;;  %1339 = vrcp.f32 %v527_v6  ;;  %v1886_v46 = vmul.f32 %v806_v42, %v1683_v49 }
 0x147   : > { %v1336_v30 = vpop.eup %1335  ;;  %v558_v3 = vmul.f32 1.0614054, %v1879_v48  ;;  %v703_v24 = vsub.f32 0.0, %v495_v62  ;;  %v528_v26 = vadd.f32 1.0, %v512_v63  ;;  %v792_v41 = vmul.f32 %v776_v43, %v1732_v23 }
 0x148   : > { %v764_v53 = vmul.f32 %v1336_v30, %v684_v52  ;;  %v653_v20 = vmul.f32 %v1842_v56, %v637_v27  ;;  %v1893_v7 = vadd.f32 %v1696_v58, %v1613_v51  ;;  %v793_v15 = vmul.f32 %v777_v14, %v1762_v1 }
 0x149   : > { %v779_v2 = vsub.f32 1.0, %v763_v9  ;;  %v574_v45 = vadd.f32 -1.4531521, %v558_v3  ;;  %1341 = vrcp.f32 %v528_v26  ;;  %v794_v49 = vmul.f32 %v778_v34, %v1767_v11 }
 0x14a   : > { %v744_v39 = vmul.f32 1.442695, %v718_v18  ;;  %vm463_vm9 = vcmp.ge.f32.partialorder %v1849_v47, 0.0  ;;  %v1899_v29 = vmul.f32 0.70710677, %v1893_v7  ;;  %v719_v32 = vmul.f32 %v703_v24, %v495_v62 }
 0x14b   : > { %v590_v23 = vmul.f32 %v1879_v48, %v574_v45  ;;  %v704_v0 = vsub.f32 0.0, %v496_v28  ;;  %v1904_v58 = vadd.f32 %v1703_v4, %v1611_v50  ;;  %v808_v42 = vadd.f32 1.0, %v792_v41 }
 0x14c   : > { %v1338_v1 = vpop.eup %1337  ;;  %v780_v37 = vsub.f32 1.0, %v764_v53  ;;  %v669_v43 = vadd.f32 0.2548296, %v653_v20  ;;  %v497_v11 = vand.u32 2147483647, %v1899_v29  ;;  %v809_v52 = vadd.f32 1.0, %v793_v15 }
 0x14d   : > { %v795_v47 = vmul.f32 %v779_v2, %v1802_v57  ;;  %v606_v6 = vadd.f32 1.4214138, %v590_v23  ;;  %v1909_v14 = vsel %vm463_vm9, 1.0, %v2138_v59  ;;  %1343 = vpow2.f32 %v744_v39 }
 0x14e   : > { %v513_v62 = vmul.f32 0.3275911, %v497_v11  ;;  %v1912_v9 = vmul.f32 0.70710677, %v1904_v58  ;;  %v1916_v50 = vadd.f32 %v1711_v8, %v1613_v51  ;;  %v810_v4 = vadd.f32 1.0, %v794_v49 }
 0x14f   : > { %v622_v27 = vmul.f32 %v1879_v48, %v606_v6  ;;  %v746_v63 = vmul.f32 1.442695, %v719_v32  ;;  %v720_v34 = vmul.f32 %v704_v0, %v496_v28  ;;  %v796_v57 = vmul.f32 %v780_v37, %v1810_v38 }
 0x150   : > { %v1919_v18 = vpop.eup %1339  ;;  %v685_v30 = vmul.f32 %v1842_v56, %v669_v43  ;;  %v529_v3 = vadd.f32 1.0, %v513_v62  ;;  %v1924_v24 = vand.u32 2147483647, %v1912_v9  ;;  %v1927_v26 = vmul.f32 %v808_v42, %v1705_v5 }
 0x151   : > { %v811_v51 = vadd.f32 1.0, %v795_v47  ;;  %v638_v8 = vadd.f32 -0.28449672, %v622_v27  ;;  %v559_v41 = vmul.f32 1.0614054, %v1919_v18  ;;  %v1931_v53 = vmul.f32 %v809_v52, %v1715_v12 }
 0x152   : > { %1345 = vrcp.f32 %v529_v3  ;;  %v514_v28 = vmul.f32 0.3275911, %v1924_v24  ;;  %v1935_v38 = vmul.f32 0.70710677, %v1916_v50  ;;  %v1940_v20 = vmul.f32 %v810_v4, %v1724_v22 }
 0x153   : > { %v1937_v56 = vpop.eup %1341  ;;  %v654_v5 = vmul.f32 %v1879_v48, %v638_v8  ;;  %v575_v15 = vadd.f32 -1.4531521, %v559_v41  ;;  %v748_v2 = vmul.f32 1.442695, %v720_v34  ;;  %v812_v45 = vadd.f32 1.0, %v796_v57 }
 0x154   : > { %v765_v49 = vmul.f32 %v1338_v1, %v685_v30  ;;  %v560_v12 = vmul.f32 1.0614054, %v1937_v56  ;;  %v530_v39 = vadd.f32 1.0, %v514_v28  ;;  %v1945_v23 = vmul.f32 %v811_v51, %v1773_v19 }
 0x155   : > { %v670_v32 = vadd.f32 0.2548296, %v654_v5  ;;  %v591_v0 = vmul.f32 %v1919_v18, %v575_v15  ;;  %1347 = vpow2.f32 %v746_v63  ;;  %v705_v37 = vsub.f32 0.0, %v497_v11 }
 0x156   : > { %v576_v42 = vadd.f32 -1.4531521, %v560_v12  ;;  %1349 = vrcp.f32 %v530_v39  ;;  %v1949_v22 = vand.u32 2147483647, %v1935_v38  ;;  %v549_v1 = vmul.f32 1.0614054, %v1719_v17 }
 0x157   : > { %v686_v43 = vmul.f32 %v1879_v48, %v670_v32  ;;  %v607_v52 = vadd.f32 1.4214138, %v591_v0  ;;  %1351 = vpow2.f32 %v748_v2  ;;  %v1344_v47 = vpop.eup %1343  ;;  %v1954_v19 = vmul.f32 %v812_v45, %v1777_v25 }
 0x158   : > { %v781_v6 = vsub.f32 1.0, %v765_v49  ;;  %v592_v62 = vmul.f32 %v1937_v56, %v576_v42  ;;  %v515_v4 = vmul.f32 0.3275911, %v1949_v22  ;;  %v551_v34 = vmul.f32 1.0614054, %v1785_v40 }
 0x159   : > { %v766_v27 = vmul.f32 %v1344_v47, %v686_v43  ;;  %v623_v63 = vmul.f32 %v1919_v18, %v607_v52  ;;  %v565_v57 = vadd.f32 -1.4531521, %v549_v1  ;;  %v721_v30 = vmul.f32 %v705_v37, %v497_v11 }
 0x15a   : > { %v608_v48 = vadd.f32 1.4214138, %v592_v62  ;;  %v531_v3 = vadd.f32 1.0, %v515_v4  ;;  %v836_v51 = vpack.c.bf16 %v1886_v46, %v1876_v16  ;;  %v567_v41 = vadd.f32 -1.4531521, %v551_v34 }
 0x15b   : > { %v782_v8 = vsub.f32 1.0, %v766_v27  ;;  %v639_v25 = vadd.f32 -0.28449672, %v623_v63  ;;  %v581_v28 = vmul.f32 %v1719_v17, %v565_v57  ;;  %v706_v2 = vsub.f32 0.0, %v1924_v24 }
 0x15c   : > { %v1963_v5 = vpop.eup %1345  ;;  %v624_v15 = vmul.f32 %v1937_v56, %v608_v48  ;;  %1353 = vrcp.f32 %v531_v3  ;;  %v839_v45 = vpack.c.bf16 %v1945_v23, %v1931_v53  ;;  %v583_v39 = vmul.f32 %v1785_v40, %v567_v41 }
 0x15d   : > { %v798_v11 = vmul.f32 %v782_v8, %v1882_v36  ;;  %v655_v49 = vmul.f32 %v1919_v18, %v639_v25  ;;  %v561_v12 = vmul.f32 1.0614054, %v1963_v5  ;;  %v750_v0 = vmul.f32 1.442695, %v721_v30 }
 0x15e   : > { %v640_v32 = vadd.f32 -0.28449672, %v624_v15  ;;  %v597_v42 = vadd.f32 1.4214138, %v581_v28  ;;  %v838_v37 = vpack.c.bf16 %v1940_v20, %v1927_v26  ;;  %v797_v52 = vmul.f32 %v781_v6, %v1861_v33 }
 0x15f   : > { %v1348_v43 = vpop.eup %1347  ;;  %v814_v1 = vadd.f32 1.0, %v798_v11  ;;  %v671_v47 = vadd.f32 0.2548296, %v655_v49  ;;  %v577_v62 = vadd.f32 -1.4531521, %v561_v12  ;;  %v722_v27 = vmul.f32 %v706_v2, %v1924_v24 }
 0x160   : > { %v1976_v4 = vpop.eup %1349  ;;  %v656_v36 = vmul.f32 %v1937_v56, %v640_v32  ;;  %v599_v63 = vadd.f32 1.4214138, %v583_v39  ;;  %v613_v34 = vmul.f32 %v1719_v17, %v597_v42  ;;  %vm453_vm10 = vcmp.ge.f32.partialorder %v1624_v60, 0.0 }
 0x161   : > { %v1352_v57 = vpop.eup %1351  ;;  %v1983_v48 = vmul.f32 %v814_v1, %v1853_v31  ;;  %v687_v33 = vmul.f32 %v1919_v18, %v671_v47  ;;  %v593_v6 = vmul.f32 %v1963_v5, %v577_v62  ;;  %v562_v30 = vmul.f32 1.0614054, %v1976_v4 }
 0x162   : > { %v672_v3 = vadd.f32 0.2548296, %v656_v36  ;;  %v707_v8 = vsub.f32 0.0, %v1949_v22  ;;  %v615_v24 = vmul.f32 %v1785_v40, %v599_v63  ;;  %v629_v25 = vadd.f32 -0.28449672, %v613_v34 }
 0x163   : > { %v767_v41 = vmul.f32 %v1348_v43, %v687_v33  ;;  %v609_v28 = vadd.f32 1.4214138, %v593_v6  ;;  %v578_v15 = vadd.f32 -1.4531521, %v562_v30  ;;  %v840_v2 = vpack.c.bf16 %v1983_v48, %v1954_v19 }
 0x164   : > { %v813_v31 = vadd.f32 1.0, %v797_v52  ;;  %v752_v11 = vmul.f32 1.442695, %v722_v27  ;;  %v631_v49 = vadd.f32 -0.28449672, %v615_v24  ;;  %v645_v18 = vmul.f32 %v1719_v17, %v629_v25 }
 0x165   : > { %v783_v12 = vsub.f32 1.0, %v767_v41  ;;  %v625_v39 = vmul.f32 %v1963_v5, %v609_v28  ;;  %1355 = vpow2.f32 %v750_v0  ;;  %v594_v32 = vmul.f32 %v1976_v4, %v578_v15 }
 0x166   : > { %v1995_v42 = vpop.eup %1353  ;;  %v688_v43 = vmul.f32 %v1937_v56, %v672_v3  ;;  %v723_v1 = vmul.f32 %v707_v8, %v1949_v22  ;;  %v647_v47 = vmul.f32 %v1785_v40, %v631_v49  ;;  %v661_v62 = vadd.f32 0.2548296, %v645_v18 }
 0x167   : > { %v799_v52 = vmul.f32 %v783_v12, %v1909_v14  ;;  %v641_v36 = vadd.f32 -0.28449672, %v625_v39  ;;  %v610_v27 = vadd.f32 1.4214138, %v594_v32  ;;  %v563_v63 = vmul.f32 1.0614054, %v1995_v42 }
 0x168   : > { %v2003_v34 = vmul.f32 %v813_v31, %v1836_v21  ;;  %1357 = vpow2.f32 %v752_v11  ;;  %v663_v0 = vadd.f32 0.2548296, %v647_v47  ;;  %v677_v33 = vmul.f32 %v1719_v17, %v661_v62 }
 0x169   : > { %v815_v6 = vadd.f32 1.0, %v799_v52  ;;  %v657_v56 = vmul.f32 %v1963_v5, %v641_v36  ;;  %v626_v22 = vmul.f32 %v1976_v4, %v610_v27  ;;  %v579_v30 = vadd.f32 -1.4531521, %v563_v63  ;;  %v2139_v36 = vld [vmem:[#allocation5_spill] sm:$0xff] }
 0x16a   : > { %v768_v3 = vmul.f32 %v1352_v57, %v688_v43  ;;  %v754_v8 = vmul.f32 1.442695, %v723_v1  ;;  %v679_v14 = vmul.f32 %v1785_v40, %v663_v0  ;;  %v757_v24 = vmul.f32 %v1750_v44, %v677_v33 }
 0x16b   : > { %v2011_v25 = vmul.f32 %v815_v6, %v1864_v35  ;;  %v673_v21 = vadd.f32 0.2548296, %v657_v56  ;;  %v642_v41 = vadd.f32 -0.28449672, %v626_v22  ;;  %v595_v28 = vmul.f32 %v1995_v42, %v579_v30 }
 0x16c   : > { %vm455_vm11 = vcmp.ge.f32.partialorder %v1631_v10, 0.0  ;;  %v469_v17 = vsel %vm453_vm10, 1.0, %v2138_v59  ;;  %v759_v57 = vmul.f32 %v1799_v13, %v679_v14  ;;  %v773_v15 = vsub.f32 1.0, %v757_v24 }
 0x16d   : > { %v689_v40 = vmul.f32 %v1963_v5, %v673_v21  ;;  %v658_v44 = vmul.f32 %v1976_v4, %v642_v41  ;;  %v611_v31 = vadd.f32 1.4214138, %v595_v28  ;;  %v841_v35 = vpack.c.bf16 %v2011_v25, %v2003_v34 }
 0x16e   : > { %vm464_vm12 = vcmp.ge.f32.partialorder %v1869_v54, 0.0  ;;  %1359 = vpow2.f32 %v754_v8  ;;  %v775_v11 = vsub.f32 1.0, %v759_v57  ;;  %v789_v49 = vmul.f32 %v773_v15, %v469_v17 }
 0x16f   : > { %v1356_v18 = vpop.eup %1355  ;;  %v784_v12 = vsub.f32 1.0, %v768_v3  ;;  %v674_v60 = vadd.f32 0.2548296, %v658_v44  ;;  %v627_v39 = vmul.f32 %v1995_v42, %v611_v31  ;;  %v471_v13 = vsel %vm455_vm11, 1.0, %v2138_v59 }
 0x170   : > { %v791_v5 = vmul.f32 %v775_v11, %v471_v13  ;;  %v805_v32 = vadd.f32 1.0, %v789_v49  ;;  %v769_v43 = vmul.f32 %v1356_v18, %v689_v40  ;;  %v421_v52 = vmul.f32 0.5, %v1619_v55 }
 0x171   : > { %v690_v1 = vmul.f32 %v1976_v4, %v674_v60  ;;  %v643_v47 = vadd.f32 -0.28449672, %v627_v39  ;;  %v423_v27 = vmul.f32 0.5, %v2139_v36  ;;  %v480_v63 = vsel %vm464_vm12, 1.0, %v2138_v59 }
 0x172   : > { %v1358_v62 = vpop.eup %1357  ;;  %v807_v34 = vadd.f32 1.0, %v791_v5  ;;  %v800_v0 = vmul.f32 %v784_v12, %v480_v63  ;;  %vm466_vm13 = vcmp.ge.f32.partialorder %v1912_v9, 0.0  ;;  %v821_v6 = vmul.f32 %v805_v32, %v421_v52 }
 0x173   : > { %v770_v10 = vmul.f32 %v1358_v62, %v690_v1  ;;  %v659_v33 = vmul.f32 %v1995_v42, %v643_v47  ;;  %vm465_vm14 = vcmp.ge.f32.partialorder %v1899_v29, 0.0  ;;  %v785_v4 = vsub.f32 1.0, %v769_v43 }
 0x174   : > { %v823_v56 = vmul.f32 %v807_v34, %v423_v27  ;;  %v482_v30 = vsel %vm466_vm13, 1.0, %v2138_v59  ;;  %v816_v8 = vadd.f32 1.0, %v800_v0  ;;  %v432_v9 = vmul.f32 0.5, %v1828_v61 }
 0x175   : > { %v786_v22 = vsub.f32 1.0, %v770_v10  ;;  %v675_v55 = vadd.f32 0.2548296, %v659_v33  ;;  %v481_v25 = vsel %vm465_vm14, 1.0, %v2138_v59  ;;  %v434_v21 = vmul.f32 0.5, %v1904_v58 }
 0x176   : > { %v837_v3 = vpack.c.bf16 %v823_v56, %v821_v6  ;;  %v801_v41 = vmul.f32 %v785_v4, %v481_v25  ;;  %vm467_vm15 = vcmp.ge.f32.partialorder %v1935_v38, 0.0  ;;  %v433_v38 = vmul.f32 0.5, %v1893_v7  ;;  %v1151_v7 = vld [vmem:[%s2130_s4] ss:$0 sm:$0xff] }
 0x177   : > { %v802_v54 = vmul.f32 %v786_v22, %v482_v30  ;;  %v691_v14 = vmul.f32 %v1995_v42, %v675_v55  ;;  %v832_v42 = vmul.f32 %v816_v8, %v432_v9  ;;  %v483_v58 = vsel %vm467_vm15, 1.0, %v2138_v59 }
 0x178   : > { %v1360_v24 = vpop.eup %1359  ;;  %1011 = vmatprep.mubr.bf16.mxu1 %v837_v3  ;;  %v817_v57 = vadd.f32 1.0, %v801_v41  ;;  %v435_v44 = vmul.f32 0.5, %v1916_v50 }
 0x179   : > { %v818_v29 = vadd.f32 1.0, %v802_v54  ;;  %v771_v28 = vmul.f32 %v1360_v24, %v691_v14  ;;  %1012 = vmatmul.mubr.bf16.vlgmr.msra.gmra.mrb[0].mxu1 %v836_v51 }
 0x17a   : > { %1019 = vmatprep.mubr.bf16.mxu1 %v839_v45  ;;  %v833_v46 = vmul.f32 %v817_v57, %v433_v38 }
 0x17b   : > { %v834_v61 = vmul.f32 %v818_v29, %v434_v21  ;;  %v787_v17 = vsub.f32 1.0, %v771_v28 }
 0x17d   : > { %v803_v15 = vmul.f32 %v787_v17, %v483_v58  ;;  %v842_v40 = vpack.c.bf16 %v834_v61, %v832_v42 }
 0x17f   : > { %v819_v16 = vadd.f32 1.0, %v803_v15 }
 0x181   : > { %v835_v51 = vmul.f32 %v819_v16, %v435_v44  ;;  %1020 = vmatmul.mubr.bf16.gmra.mrb[4].mxu1 %v838_v37 }
 0x182   : > { %1027 = vmatprep.mubr.bf16.mxu1 %v841_v35 }
 0x183   : > { %v843_v53 = vpack.c.bf16 %v835_v51, %v833_v46 }
 0x189   : > { %1028 = vmatmul.mubr.bf16.gmra.mrb[8].mxu1 %v840_v2 }
 0x18a   : > { %1035 = vmatprep.mubr.bf16.mxu1 %v843_v53 }
 0x191   : > { %1036 = vmatmul.mubr.bf16.gmra.mrb[12].mxu1 %v842_v40 }
 0x24c   : > { %v1190_v59 = vpop.f32.mrb[0].mxu1 }
 0x24d   : > { %v1191_v50 = vpop.f32.mrb[1].mxu1 }
 0x24e   : > { %v1192_v23 = vadd.f32 %v1191_v50, %v1190_v59  ;;  %v1193_v26 = vpop.f32.mrb[2].mxu1 }
 0x24f   : > { %v1194_v20 = vpop.f32.mrb[3].mxu1 }
 0x250   : > { %v1014_v45 = vadd.f32 %v1192_v23, %v1151_v7  ;;  %v1195_v37 = vadd.f32 %v1194_v20, %v1193_v26 }
 0x252   : > { %1044 = vst [vmem:[%s2064_s17] sm:$0xff] %v1014_v45  ;;  %v1017_v19 = vadd.f32 %v1195_v37, %v1151_v7 }
 0x254   : > { %1045 = vst [vmem:[%s2064_s17 + $0x8] sm:$0xff] %v1017_v19  ;;  %v1196_v48 = vpop.f32.mrb[4].mxu1 }
 0x255   : > { %v1197_v2 = vpop.f32.mrb[5].mxu1 }
 0x256   : > { %v1198_v31 = vadd.f32 %v1197_v2, %v1196_v48  ;;  %v1199_v35 = vpop.f32.mrb[6].mxu1 }
 0x257   : > { %v1200_v11 = vpop.f32.mrb[7].mxu1 }
 0x258   : > { %v1022_v49 = vadd.f32 %v1198_v31, %v1151_v7  ;;  %v1201_v18 = vadd.f32 %v1200_v11, %v1199_v35 }
 0x25a   : > { %1046 = vst [vmem:[%s2064_s17 + $0x10] sm:$0xff] %v1022_v49  ;;  %v1025_v12 = vadd.f32 %v1201_v18, %v1151_v7 }
 0x25c   : > { %1047 = vst [vmem:[%s2064_s17 + $0x18] sm:$0xff] %v1025_v12  ;;  %v1202_v60 = vpop.f32.mrb[8].mxu1 }
 0x25d   : > { %v1203_v39 = vpop.f32.mrb[9].mxu1 }
 0x25e   : > { %v1204_v13 = vadd.f32 %v1203_v39, %v1202_v60  ;;  %v1205_v5 = vpop.f32.mrb[10].mxu1 }
 0x25f   : > { %v1206_v32 = vpop.f32.mrb[11].mxu1 }
 0x260   : > { %v1030_v43 = vadd.f32 %v1204_v13, %v1151_v7  ;;  %v1207_v1 = vadd.f32 %v1206_v32, %v1205_v5 }
 0x262   : > { %1048 = vst [vmem:[%s2064_s17 + $0x20] sm:$0xff] %v1030_v43  ;;  %v1033_v47 = vadd.f32 %v1207_v1, %v1151_v7 }
 0x264   : > { %1049 = vst [vmem:[%s2064_s17 + $0x28] sm:$0xff] %v1033_v47  ;;  %v1208_v62 = vpop.f32.mrb[12].mxu1 }
 0x265   : > { %v1209_v52 = vpop.f32.mrb[13].mxu1 }
 0x266   : > { %v1210_v36 = vadd.f32 %v1209_v52, %v1208_v62  ;;  %v1211_v27 = vpop.f32.mrb[14].mxu1 }
 0x267   : > { %v1212_v63 = vpop.f32.mrb[15].mxu1 }
 0x268   : > { %v1038_v34 = vadd.f32 %v1210_v36, %v1151_v7  ;;  %v1213_v0 = vadd.f32 %v1212_v63, %v1211_v27 }
 0x26a   : > { %1050 = vst [vmem:[%s2064_s17 + $0x30] sm:$0xff] %v1038_v34  ;;  %v1041_v10 = vadd.f32 %v1213_v0, %v1151_v7 }
 0x26c   : > { %1051 = vst [vmem:[%s2064_s17 + $0x38] sm:$0xff] %v1041_v10 }
 0x26d   : > { %1374 = shalt.err (!%p1371_p3)
}
 0x26e   : > { %s1375_s10 = scalar_lea.hbm %s2077_s30, 1024  ;;  %s1379_s14 = scalar_lea.hbm %s2131_s5, 2048 }
 0x26f   : > { %p1376_p4 = scmp.ne.s32.totalorder %s2077_s30, %s1375_s10  ;;  %p1380_p9 = scmp.lt.u32.totalorder %s2077_s30, %s2131_s5 }
 0x270   : > { %p1381_p10 = scmp.lt.u32.totalorder %s1379_s14, %s1375_s10  ;;  %p1383_p12 = scmp.lt.u32.totalorder %s1375_s10, %s2077_s30 }
 0x271   : > { %p1377_p7 = pnand %p1376_p4, %p1498_p5 }
 0x272   : > { %p1382_p11 = por %p1381_p10, %p1380_p9 }
 0x273   : > { %p1378_p8 = pneg %p1377_p7 }
 0x274   : > { %p1384_p13 = por %p1383_p12, %p1382_p11 }
 0x276   : > { %p1385_p0 = pnand %p1384_p13, %p1378_p8 }
 0x278   : > { %1388 = shalt.err (!%p1385_p0)
}
 0x279   : > { %s1428_s17 = smov 128   ;;  %s1429_s23 = smov 8  }
 0x27a   : > { %1214 = dma.vmem_to_hbm [thread:$0]  (%p1498_p5), %s2079_s25, 1024, %s2077_s30, %s2085_s6, %s1428_s17, %s1428_s17, %s1429_s23  }
 0x27b PF: > { %p1220_p1 = scmp.ge.s32.totalorder %s1423_s21, 2  ;;  %s1081_s11 = sand.u32 1, %s1411_s18  }
 0x27c   : > { %s1082_s26 = scalar_lea.sflag [#allocation3], %s1081_s11 }
 0x27d   : > { %p1217_p2 = pnand %p1220_p1, %p1502_p6 }
 0x27f   : > { %1406 = dma.done.wait (!%p1217_p2), %s1082_s26, 1024  }
 0x280   : > { %1408 = vsyncadd (!%p1217_p2), %s1082_s26, 4294966272  ;;  %p15_p3 = scmp.ge.s32.totalorder %s1485_s24, 4   ;;  %s2140_s18 = smov %s1415_s19 }
 0x281   : > { %s2141_s19 = smov %s1419_s20  ;;  %s2142_s20 = smov %s1496_s27 }
 0x282   : > { %s2143_s21 = smov %s1485_s24  ;;  %17 = sbr.rel (!%p15_p3) target bundleno = 3 (0x3), region = 75 }
 0x289   :  { %1087 = vsyncpa [#allocation3], 1 }
 0x28a   :  { %1089 = vsyncpa [#allocation3 + $0x1], 1 }

</bundles_post_ra>
